<compile_context>
chip_gen: v7x
topology: tpu7x:2x2x1
jax: 0.10.0
libtpu: 0.0.40
codegen_flags: <defaults>
</compile_context>

<pallas_src>
import math
import functools

import jax
import jax.numpy as jnp
from jax.experimental import pallas as pl
from jax.experimental.pallas import tpu as pltpu


FP = 128  # lane-dense padded feature width


def _gcn_fused_kernel(a_ref, h_ref, w_ref, b_ref, wout_ref, bout_ref, logits_ref,
                      *, n_layers, n_graphs, nodes_per_graph):
    """Whole GCN forward for one batched graph, fully VMEM resident.

    a_ref     : [N, N]        norm-folded adjacency A_hat
    h_ref     : [N, 128]      padded input node features
    w_ref     : [L, 128, 128] padded, stacked GCN layer weights
    b_ref     : [L, 1, 128]   padded, stacked GCN layer biases
    wout_ref  : [128, 128]    padded out_layer weight (col 0 real)
    bout_ref  : [1, 128]      padded out_layer bias   (col 0 real)
    logits_ref: [B, 128]      per-graph logits (col 0 real)
    """
    a_hat = a_ref[...]
    h = h_ref[...]

    # --- GCN layer stack (all layers apply the activation, as in GCN.__init__)
    # With both feature dims padded to 128 the two matmul orders have equal
    # FLOPs, so we keep A_hat @ (h @ W).
    for l in range(n_layers):
        hw = jnp.dot(h, w_ref[l], preferred_element_type=jnp.float32)
        agg = jnp.dot(a_hat, hw, preferred_element_type=jnp.float32)
        h = jnp.maximum(agg + b_ref[l], 0.0)

    # --- readout: per-graph max pooling over nodes + Linear(n_hidden, 1)
    for g in range(n_graphs):
        seg = h[g * nodes_per_graph:(g + 1) * nodes_per_graph, :]
        pooled = jnp.max(seg, axis=0, keepdims=True)                  # [1, 128]
        logit = jnp.dot(pooled, wout_ref[...],
                        preferred_element_type=jnp.float32) + bout_ref[...]
        logits_ref[pl.ds(g, 1), :] = logit


def _pad2(x, rows, cols):
    out = jnp.zeros((rows, cols), x.dtype)
    return out.at[: x.shape[0], : x.shape[1]].set(x)


@functools.partial(jax.jit, static_argnames=("n_graphs", "nodes_per_graph"))
def gcn_forward(a, norm, node_ids, word_embeds, gcn_weights, gcn_biases,
                w_out, b_out, y_data, *, n_graphs, nodes_per_graph):
    """GCN.forward: embeds lookup -> GCN layers -> max pool -> out_layer ->
    (BCE-with-logits loss, sigmoid prediction)."""
    n = a.shape[0]
    n_layers = len(gcn_weights)

    # word-embedding lookup (XLA gather).
    h0 = jnp.take(word_embeds, node_ids, axis=0)                      # [N, in_feats]

    # Fold the symmetric normalization into the adjacency once.
    a_hat = (norm * a) * norm.T                                       # [N, N]

    # Lane-dense padding + stacking (done under jit; in production these would
    # be pre-padded once).
    h0_p = _pad2(h0, n, FP)
    w_all = jnp.stack([_pad2(w, FP, FP) for w in gcn_weights])        # [L,128,128]
    b_all = jnp.stack([_pad2(b.reshape(1, -1), 1, FP) for b in gcn_biases])
    wout_p = _pad2(w_out, FP, FP)
    bout_p = _pad2(b_out.reshape(1, -1), 1, FP)

    kernel = functools.partial(_gcn_fused_kernel, n_layers=n_layers,
                               n_graphs=n_graphs,
                               nodes_per_graph=nodes_per_graph)

    logits_p = pl.pallas_call(
        kernel,
        out_shape=jax.ShapeDtypeStruct((n_graphs, FP), jnp.float32),
        grid=(1,),
        in_specs=[
            pl.BlockSpec(a_hat.shape, lambda i: (0, 0)),     # A_hat [N, N]
            pl.BlockSpec(h0_p.shape, lambda i: (0, 0)),      # h0    [N, 128]
            pl.BlockSpec(w_all.shape, lambda i: (0, 0, 0)),  # W     [L, 128, 128]
            pl.BlockSpec(b_all.shape, lambda i: (0, 0, 0)),  # b     [L, 1, 128]
            pl.BlockSpec(wout_p.shape, lambda i: (0, 0)),    # W_out [128, 128]
            pl.BlockSpec(bout_p.shape, lambda i: (0, 0)),    # b_out [1, 128]
        ],
        out_specs=pl.BlockSpec((n_graphs, FP), lambda i: (0, 0)),
        compiler_params=pltpu.CompilerParams(
            dimension_semantics=("arbitrary",),
            vmem_limit_bytes=32 * 1024 * 1024,   # safe on v5e/v6e/v7x; tiny footprint
        ),
    )(a_hat, h0_p, w_all, b_all, wout_p, bout_p)

    logits = logits_p[:, 0]                                           # [B]
    y_pred = jax.nn.sigmoid(logits)
    # binary_cross_entropy_with_logits, mean reduction
    loss = jnp.mean(jnp.maximum(logits, 0.0) - logits * y_data
                    + jnp.log1p(jnp.exp(-jnp.abs(logits))))
    return loss, y_pred


def init_params(key, in_feats, n_hidden, n_layers):
    """Mirror GCN.init_weights: xavier_uniform(gain=sqrt(2)) for >=2-D params,
    uniform(-1/sqrt(n), 1/sqrt(n)) for 1-D params."""
    gain = math.sqrt(2.0)
    dims = [(in_feats, n_hidden)] + [(n_hidden, n_hidden)] * (n_layers - 1)
    ws, bs = [], []
    for fi, fo in dims:
        key, kw, kb = jax.random.split(key, 3)
        bound = gain * math.sqrt(6.0 / (fi + fo))
        ws.append(jax.random.uniform(kw, (fi, fo), jnp.float32, -bound, bound))
        stdv = 1.0 / math.sqrt(fo)
        bs.append(jax.random.uniform(kb, (fo,), jnp.float32, -stdv, stdv))
    key, kw, kb = jax.random.split(key, 3)
    bound = gain * math.sqrt(6.0 / (n_hidden + 1))
    w_out = jax.random.uniform(kw, (n_hidden, 1), jnp.float32, -bound, bound)
    b_out = jax.random.uniform(kb, (1,), jnp.float32, -1.0, 1.0)
    return ws, bs, w_out, b_out


def _reference(a, norm, h0, gcn_ws, gcn_bs, w_out, b_out, y_data,
               n_graphs, nodes_per_graph):
    """Pure-JAX reference with the original (un-folded, un-padded) math."""
    h = h0
    for w, b in zip(gcn_ws, gcn_bs):
        h = (h @ w) * norm
        h = (a @ h) * norm
        h = jnp.maximum(h + b, 0.0)
    pooled = h.reshape(n_graphs, nodes_per_graph, -1).max(axis=1)
    logits = (pooled @ w_out + b_out).reshape(-1)
    y_pred = jax.nn.sigmoid(logits)
    loss = jnp.mean(jnp.maximum(logits, 0.0) - logits * y_data
                    + jnp.log1p(jnp.exp(-jnp.abs(logits))))
    return loss, y_pred


if __name__ == "__main__":
    key = jax.random.PRNGKey(0)

    B, NP = 2, 16            # 2 graphs, 16 word nodes each -> N = 32
    N = B * NP
    in_feats, n_hidden, n_layers = 8, 32, 2
    vocab = 64

    k_adj, k_emb, k_ids, k_par = jax.random.split(key, 4)

    # block-diagonal weighted adjacency (dgl.batch of B 'ww' graphs),
    # symmetric with self loops; A[i, j] = weight of edge j -> i
    a = jnp.zeros((N, N), jnp.float32)
    for g in range(B):
        kg = jax.random.fold_in(k_adj, g)
        ag = jax.random.uniform(kg, (NP, NP), jnp.float32, 0.0, 1.0)
        ag = 0.5 * (ag + ag.T) + jnp.eye(NP, dtype=jnp.float32)
        a = a.at[g * NP:(g + 1) * NP, g * NP:(g + 1) * NP].set(ag)
    deg = jnp.sum(a, axis=1)
    norm = (1.0 / jnp.sqrt(deg)).reshape(N, 1).astype(jnp.float32)

    word_embeds = jax.random.normal(k_emb, (vocab, in_feats), jnp.float32)
    node_ids = jax.random.randint(k_ids, (N,), 0, vocab)
    y_data = jnp.array([1.0, 0.0], jnp.float32)

    gcn_ws, gcn_bs, w_out, b_out = init_params(k_par, in_feats, n_hidden, n_layers)

    loss, y_pred = gcn_forward(a, norm, node_ids, word_embeds,
                               tuple(gcn_ws), tuple(gcn_bs), w_out, b_out, y_data,
                               n_graphs=B, nodes_per_graph=NP)
    loss, y_pred = jax.block_until_ready((loss, y_pred))

    h0 = jnp.take(word_embeds, node_ids, axis=0)
    ref_loss, ref_pred = _reference(a, norm, h0, gcn_ws, gcn_bs, w_out, b_out,
                                    y_data, B, NP)

    assert y_pred.shape == (B,)
    assert jnp.allclose(y_pred, ref_pred, atol=1e-5, rtol=1e-5)
    assert jnp.allclose(loss, ref_loss, atol=1e-5, rtol=1e-5)

    print("KERNEL_OK")
</pallas_src>

<mosaic_0001>
module attributes {stable_mosaic.version = 11 : i64} {
  func.func @_gcn_fused_kernel(%arg0: i32, %arg1: memref<32x32xf32, #tpu.memory_space<vmem>>, %arg2: memref<32x128xf32, #tpu.memory_space<vmem>>, %arg3: memref<2x128x128xf32, #tpu.memory_space<vmem>>, %arg4: memref<2x1x128xf32, #tpu.memory_space<vmem>>, %arg5: memref<128x128xf32, #tpu.memory_space<vmem>>, %arg6: memref<1x128xf32, #tpu.memory_space<vmem>>, %arg7: memref<2x128xf32, #tpu.memory_space<vmem>>) attributes {dimension_semantics = [#tpu.dimension_semantics<arbitrary>], iteration_bounds = array<i64: 1>, scalar_prefetch = 0 : i64, scratch_operands = 0 : i64, tpu.core_type = #tpu.core_type<tc>, window_params = [{pipeline_mode = #tpu.pipeline_mode<synchronous>, transform_indices = @transform_0, window_bounds = array<i64: 32, 32>}, {pipeline_mode = #tpu.pipeline_mode<synchronous>, transform_indices = @transform_1, window_bounds = array<i64: 32, 128>}, {pipeline_mode = #tpu.pipeline_mode<synchronous>, transform_indices = @transform_2, window_bounds = array<i64: 2, 128, 128>}, {pipeline_mode = #tpu.pipeline_mode<synchronous>, transform_indices = @transform_3, window_bounds = array<i64: 2, 1, 128>}, {pipeline_mode = #tpu.pipeline_mode<synchronous>, transform_indices = @transform_4, window_bounds = array<i64: 128, 128>}, {pipeline_mode = #tpu.pipeline_mode<synchronous>, transform_indices = @transform_5, window_bounds = array<i64: 1, 128>}, {pipeline_mode = #tpu.pipeline_mode<synchronous>, transform_indices = @transform_6, window_bounds = array<i64: 2, 128>}]} {
    %c0 = arith.constant 0 : index
    %c0_0 = arith.constant 0 : index
    %0 = vector.load %arg1[%c0, %c0_0] : memref<32x32xf32, #tpu.memory_space<vmem>>, vector<32x32xf32>
    %c0_1 = arith.constant 0 : index
    %c0_2 = arith.constant 0 : index
    %1 = vector.load %arg2[%c0_1, %c0_2] : memref<32x128xf32, #tpu.memory_space<vmem>>, vector<32x128xf32>
    %c0_3 = arith.constant 0 : index
    %c0_4 = arith.constant 0 : index
    %c0_5 = arith.constant 0 : index
    %2 = vector.load %arg3[%c0_3, %c0_4, %c0_5] : memref<2x128x128xf32, #tpu.memory_space<vmem>>, vector<1x128x128xf32>
    %3 = vector.shape_cast %2 : vector<1x128x128xf32> to vector<128x128xf32>
    %cst = arith.constant dense<0.000000e+00> : vector<32x128xf32>
    %4 = tpu.matmul %1, %3, %cst {dimension_numbers = #tpu.dot_dimension_numbers<[1], [0], [0], [1], [0, 0, 1, 1], [], []>} : vector<32x128xf32>, vector<128x128xf32>, vector<32x128xf32> -> vector<32x128xf32>
    %cst_6 = arith.constant dense<0.000000e+00> : vector<32x128xf32>
    %5 = tpu.matmul %0, %4, %cst_6 {dimension_numbers = #tpu.dot_dimension_numbers<[1], [0], [0], [1], [0, 0, 1, 1], [], []>} : vector<32x32xf32>, vector<32x128xf32>, vector<32x128xf32> -> vector<32x128xf32>
    %c0_7 = arith.constant 0 : index
    %c0_8 = arith.constant 0 : index
    %c0_9 = arith.constant 0 : index
    %6 = vector.load %arg4[%c0_7, %c0_8, %c0_9] : memref<2x1x128xf32, #tpu.memory_space<vmem>>, vector<1x1x128xf32>
    %7 = vector.shape_cast %6 : vector<1x1x128xf32> to vector<1x128xf32>
    %8 = vector.broadcast %7 : vector<1x128xf32> to vector<32x128xf32>
    %9 = arith.addf %5, %8 : vector<32x128xf32>
    %cst_10 = arith.constant 0.000000e+00 : f32
    %10 = vector.broadcast %cst_10 : f32 to vector<32x128xf32>
    %11 = arith.maximumf %9, %10 : vector<32x128xf32>
    %c1 = arith.constant 1 : index
    %c0_11 = arith.constant 0 : index
    %c0_12 = arith.constant 0 : index
    %12 = vector.load %arg3[%c1, %c0_11, %c0_12] : memref<2x128x128xf32, #tpu.memory_space<vmem>>, vector<1x128x128xf32>
    %13 = vector.shape_cast %12 : vector<1x128x128xf32> to vector<128x128xf32>
    %cst_13 = arith.constant dense<0.000000e+00> : vector<32x128xf32>
    %14 = tpu.matmul %11, %13, %cst_13 {dimension_numbers = #tpu.dot_dimension_numbers<[1], [0], [0], [1], [0, 0, 1, 1], [], []>} : vector<32x128xf32>, vector<128x128xf32>, vector<32x128xf32> -> vector<32x128xf32>
    %cst_14 = arith.constant dense<0.000000e+00> : vector<32x128xf32>
    %15 = tpu.matmul %0, %14, %cst_14 {dimension_numbers = #tpu.dot_dimension_numbers<[1], [0], [0], [1], [0, 0, 1, 1], [], []>} : vector<32x32xf32>, vector<32x128xf32>, vector<32x128xf32> -> vector<32x128xf32>
    %c1_15 = arith.constant 1 : index
    %c0_16 = arith.constant 0 : index
    %c0_17 = arith.constant 0 : index
    %16 = vector.load %arg4[%c1_15, %c0_16, %c0_17] : memref<2x1x128xf32, #tpu.memory_space<vmem>>, vector<1x1x128xf32>
    %17 = vector.shape_cast %16 : vector<1x1x128xf32> to vector<1x128xf32>
    %18 = vector.broadcast %17 : vector<1x128xf32> to vector<32x128xf32>
    %19 = arith.addf %15, %18 : vector<32x128xf32>
    %cst_18 = arith.constant 0.000000e+00 : f32
    %20 = vector.broadcast %cst_18 : f32 to vector<32x128xf32>
    %21 = arith.maximumf %19, %20 : vector<32x128xf32>
    %22 = vector.extract_strided_slice %21 {offsets = [0, 0], sizes = [16, 128], strides = [1, 1]} : vector<32x128xf32> to vector<16x128xf32>
    %cst_19 = arith.constant dense<0xFF800000> : vector<128xf32>
    %23 = vector.multi_reduction <maximumf>, %22, %cst_19 [0] : vector<16x128xf32> to vector<128xf32>
    %24 = vector.shape_cast %23 : vector<128xf32> to vector<1x128xf32>
    %c0_20 = arith.constant 0 : index
    %c0_21 = arith.constant 0 : index
    %25 = vector.load %arg5[%c0_20, %c0_21] : memref<128x128xf32, #tpu.memory_space<vmem>>, vector<128x128xf32>
    %cst_22 = arith.constant dense<0.000000e+00> : vector<1x128xf32>
    %26 = tpu.matmul %24, %25, %cst_22 {dimension_numbers = #tpu.dot_dimension_numbers<[1], [0], [0], [1], [0, 0, 1, 1], [], []>} : vector<1x128xf32>, vector<128x128xf32>, vector<1x128xf32> -> vector<1x128xf32>
    %c0_23 = arith.constant 0 : index
    %c0_24 = arith.constant 0 : index
    %27 = vector.load %arg6[%c0_23, %c0_24] : memref<1x128xf32, #tpu.memory_space<vmem>>, vector<1x128xf32>
    %28 = arith.addf %26, %27 : vector<1x128xf32>
    %c0_25 = arith.constant 0 : index
    %c0_26 = arith.constant 0 : index
    %29 = vector.load %arg7[%c0_25, %c0_26] : memref<2x128xf32, #tpu.memory_space<vmem>>, vector<1x128xf32>
    tpu.vector_store %arg7[%c0_25, %c0_26], %28 {strides = array<i32>} : memref<2x128xf32, #tpu.memory_space<vmem>>, vector<1x128xf32>,
    %30 = vector.extract_strided_slice %21 {offsets = [16, 0], sizes = [16, 128], strides = [1, 1]} : vector<32x128xf32> to vector<16x128xf32>
    %cst_27 = arith.constant dense<0xFF800000> : vector<128xf32>
    %31 = vector.multi_reduction <maximumf>, %30, %cst_27 [0] : vector<16x128xf32> to vector<128xf32>
    %32 = vector.shape_cast %31 : vector<128xf32> to vector<1x128xf32>
    %c0_28 = arith.constant 0 : index
    %c0_29 = arith.constant 0 : index
    %33 = vector.load %arg5[%c0_28, %c0_29] : memref<128x128xf32, #tpu.memory_space<vmem>>, vector<128x128xf32>
    %cst_30 = arith.constant dense<0.000000e+00> : vector<1x128xf32>
    %34 = tpu.matmul %32, %33, %cst_30 {dimension_numbers = #tpu.dot_dimension_numbers<[1], [0], [0], [1], [0, 0, 1, 1], [], []>} : vector<1x128xf32>, vector<128x128xf32>, vector<1x128xf32> -> vector<1x128xf32>
    %c0_31 = arith.constant 0 : index
    %c0_32 = arith.constant 0 : index
    %35 = vector.load %arg6[%c0_31, %c0_32] : memref<1x128xf32, #tpu.memory_space<vmem>>, vector<1x128xf32>
    %36 = arith.addf %34, %35 : vector<1x128xf32>
    %c1_33 = arith.constant 1 : index
    %c0_34 = arith.constant 0 : index
    %37 = vector.load %arg7[%c1_33, %c0_34] : memref<2x128xf32, #tpu.memory_space<vmem>>, vector<1x128xf32>
    tpu.vector_store %arg7[%c1_33, %c0_34], %36 {strides = array<i32>} : memref<2x128xf32, #tpu.memory_space<vmem>>, vector<1x128xf32>,
    return
  }
  func.func @transform_0(%arg0: i32) -> (i32, i32) {
    %c0_i32 = arith.constant 0 : i32
    %c0_i32_0 = arith.constant 0 : i32
    %c0_i32_1 = arith.constant 0 : i32
    return %c0_i32, %c0_i32_0 : i32, i32
  }
  func.func @transform_1(%arg0: i32) -> (i32, i32) {
    %c0_i32 = arith.constant 0 : i32
    %c0_i32_0 = arith.constant 0 : i32
    %c0_i32_1 = arith.constant 0 : i32
    return %c0_i32, %c0_i32_0 : i32, i32
  }
  func.func @transform_2(%arg0: i32) -> (i32, i32, i32) {
    %c0_i32 = arith.constant 0 : i32
    %c0_i32_0 = arith.constant 0 : i32
    %c0_i32_1 = arith.constant 0 : i32
    %c0_i32_2 = arith.constant 0 : i32
    return %c0_i32, %c0_i32_0, %c0_i32_1 : i32, i32, i32
  }
  func.func @transform_3(%arg0: i32) -> (i32, i32, i32) {
    %c0_i32 = arith.constant 0 : i32
    %c0_i32_0 = arith.constant 0 : i32
    %c0_i32_1 = arith.constant 0 : i32
    %c0_i32_2 = arith.constant 0 : i32
    return %c0_i32, %c0_i32_0, %c0_i32_1 : i32, i32, i32
  }
  func.func @transform_4(%arg0: i32) -> (i32, i32) {
    %c0_i32 = arith.constant 0 : i32
    %c0_i32_0 = arith.constant 0 : i32
    %c0_i32_1 = arith.constant 0 : i32
    return %c0_i32, %c0_i32_0 : i32, i32
  }
  func.func @transform_5(%arg0: i32) -> (i32, i32) {
    %c0_i32 = arith.constant 0 : i32
    %c0_i32_0 = arith.constant 0 : i32
    %c0_i32_1 = arith.constant 0 : i32
    return %c0_i32, %c0_i32_0 : i32, i32
  }
  func.func @transform_6(%arg0: i32) -> (i32, i32) {
    %c0_i32 = arith.constant 0 : i32
    %c0_i32_0 = arith.constant 0 : i32
    %c0_i32_1 = arith.constant 0 : i32
    return %c0_i32, %c0_i32_0 : i32, i32
  }
}

</mosaic_0001>

<bundles_post_ra>
// kernel: gcn_forward.1
= control target key start
LH: loop header
LB: loop body
LE: loop exit
PB: predicated region body
PF: predicated region fallthrough
CT: control target
= control target key end

     0   :  { %vm139_vm0 = vcmask 261120   ;;  %vm1057_vm1 = vmmov 0   ;;  %s1316_s2 = inlined_call_operand.vmem [shape: f32[2,128,128], index: 2, kind: input, shape index: {}]   ;;  %s1317_s1 = inlined_call_operand.vmem [shape: f32[32,128], index: 1, kind: input, shape index: {}]   ;;  %s1318_s0 = inlined_call_operand.vmem [shape: f32[32,32], index: 0, kind: input, shape index: {}]   ;;  %s1319_s3 = inlined_call_operand.vmem [shape: f32[2,1,128], index: 3, kind: input, shape index: {}]   ;;  %s1320_s4 = inlined_call_operand.vmem [shape: f32[128,128], index: 4, kind: input, shape index: {}]   ;;  %s1321_s5 = inlined_call_operand.vmem [shape: f32[1,128], index: 5, kind: input, shape index: {}]   ;;  %s1322_s6 = inlined_call_operand.vmem [shape: f32[2,128], index: 6, kind: output, shape index: {}]  }
   0x1   :  { %v31_v0 = vld [vmem:[%s1316_s2] sm:$0xff]  ;;  %v32_v1 = vld [vmem:[%s1316_s2 + $0x8] sm:$0xff]  ;;  %v33_v2 = vld [vmem:[%s1316_s2 + $0x10] sm:$0xff] }
   0x2   :  { %v925_v3 = vpack.c.bf16 %v32_v1, %v31_v0  ;;  %v34_v4 = vld [vmem:[%s1316_s2 + $0x18] sm:$0xff]  ;;  %v35_v6 = vld [vmem:[%s1316_s2 + $0x20] sm:$0xff]  ;;  %v36_v7 = vld [vmem:[%s1316_s2 + $0x28] sm:$0xff] }
   0x3   :  { %v929_v5 = vpack.c.bf16 %v34_v4, %v33_v2  ;;  %v933_v8 = vpack.c.bf16 %v36_v7, %v35_v6  ;;  %v27_v9 = vld [vmem:[%s1317_s1] sm:$0xff]  ;;  %v37_v10 = vld [vmem:[%s1316_s2 + $0x30] sm:$0xff]  ;;  %v38_v11 = vld [vmem:[%s1316_s2 + $0x38] sm:$0xff] }
   0x4   :  { %926 = vmatprep.subr.bf16.mxu0 %v925_v3  ;;  %783 = vmatprep.mubr.f32.mxu0 %v27_v9  ;;  %v937_v12 = vpack.c.bf16 %v38_v11, %v37_v10  ;;  %v39_v13 = vld [vmem:[%s1316_s2 + $0x40] sm:$0xff]  ;;  %v40_v14 = vld [vmem:[%s1316_s2 + $0x48] sm:$0xff]  ;;  %v41_v16 = vld [vmem:[%s1316_s2 + $0x50] sm:$0xff] }
   0x5   :  { %928 = vmatpush3.bf16.msra.mxu0 %v925_v3  ;;  %v941_v15 = vpack.c.bf16 %v40_v14, %v39_v13  ;;  %v42_v17 = vld [vmem:[%s1316_s2 + $0x58] sm:$0xff]  ;;  %v43_v19 = vld [vmem:[%s1316_s2 + $0x60] sm:$0xff]  ;;  %v44_v20 = vld [vmem:[%s1316_s2 + $0x68] sm:$0xff]  ;;  %v1056_v13 = vmov 0.0|0.0  }
   0x6   :  { %930 = vmatprep.subr.bf16.mxu0 %v929_v5  ;;  %v945_v18 = vpack.c.bf16 %v42_v17, %v41_v16  ;;  %v949_v21 = vpack.c.bf16 %v44_v20, %v43_v19  ;;  %v45_v22 = vld [vmem:[%s1316_s2 + $0x70] sm:$0xff]  ;;  %v46_v23 = vld [vmem:[%s1316_s2 + $0x78] sm:$0xff]  ;;  %v28_v25 = vld [vmem:[%s1317_s1 + $0x8] sm:$0xff] }
   0x7   :  { %v953_v24 = vpack.c.bf16 %v46_v23, %v45_v22  ;;  %v29_v26 = vld [vmem:[%s1317_s1 + $0x10] sm:$0xff]  ;;  %v30_v27 = vld [vmem:[%s1317_s1 + $0x18] sm:$0xff]  ;;  %v23_v28 = vld [vmem:[%s1318_s0] sm:$0xff] }
   0x8   :  { %797 = vmatprep.mubr.msk.f32.mxu1 %vm139_vm0, %v23_v28  ;;  %v639_v32 = vld [vmem:[%s1316_s2 + $0x80] sm:$0xff]  ;;  %v640_v33 = vld [vmem:[%s1316_s2 + $0x88] sm:$0xff]  ;;  %v641_v38 = vld [vmem:[%s1316_s2 + $0x90] sm:$0xff] }
   0x9   :  { %932 = vmatpush3.bf16.msra.mxu0 %v929_v5  ;;  %v965_v37 = vpack.c.bf16 %v640_v33, %v639_v32  ;;  %v642_v39 = vld [vmem:[%s1316_s2 + $0x98] sm:$0xff]  ;;  %v1174_v40 = vld [vmem:[%s1318_s0 + $0x8] sm:$0xff]  ;;  %v1179_v41 = vld [vmem:[%s1318_s0 + $0x10] sm:$0xff] }
   0xa   :  { %934 = vmatprep.subr.bf16.mxu0 %v933_v8  ;;  %v969_v42 = vpack.c.bf16 %v642_v39, %v641_v38  ;;  %v643_v43 = vld [vmem:[%s1316_s2 + $0xa0] sm:$0xff]  ;;  %v644_v44 = vld [vmem:[%s1316_s2 + $0xa8] sm:$0xff]  ;;  %v1194_v45 = vld [vmem:[%s1318_s0 + $0x18] sm:$0xff] }
   0xb   :  { %v973_v46 = vpack.c.bf16 %v644_v44, %v643_v43  ;;  %v645_v47 = vld [vmem:[%s1316_s2 + $0xb0] sm:$0xff]  ;;  %v646_v48 = vld [vmem:[%s1316_s2 + $0xb8] sm:$0xff]  ;;  %v647_v50 = vld [vmem:[%s1316_s2 + $0xc0] sm:$0xff] }
   0xc   :  { %v977_v49 = vpack.c.bf16 %v646_v48, %v645_v47  ;;  %v648_v51 = vld [vmem:[%s1316_s2 + $0xc8] sm:$0xff]  ;;  %v649_v53 = vld [vmem:[%s1316_s2 + $0xd0] sm:$0xff]  ;;  %v650_v54 = vld [vmem:[%s1316_s2 + $0xd8] sm:$0xff] }
   0xd   :  { %936 = vmatpush3.bf16.msra.mxu0 %v933_v8  ;;  %v981_v52 = vpack.c.bf16 %v648_v51, %v647_v50  ;;  %v985_v55 = vpack.c.bf16 %v650_v54, %v649_v53  ;;  %v651_v56 = vld [vmem:[%s1316_s2 + $0xe0] sm:$0xff]  ;;  %v652_v57 = vld [vmem:[%s1316_s2 + $0xe8] sm:$0xff]  ;;  %v653_v59 = vld [vmem:[%s1316_s2 + $0xf0] sm:$0xff] }
   0xe   :  { %938 = vmatprep.subr.bf16.mxu0 %v937_v12  ;;  %v989_v58 = vpack.c.bf16 %v652_v57, %v651_v56  ;;  %v654_v60 = vld [vmem:[%s1316_s2 + $0xf8] sm:$0xff]  ;;  %v634_v62 = vld [vmem:[%s1319_s3] ss:$0 sm:$0xff]  ;;  %v452_v19 = vld [vmem:[%s1320_s4 + $0x28] sm:$0xff] }
   0xf   :  { %v993_v61 = vpack.c.bf16 %v654_v60, %v653_v59  ;;  %v447_v11 = vld [vmem:[%s1320_s4] sm:$0xff]  ;;  %v450_v16 = vld [vmem:[%s1320_s4 + $0x18] sm:$0xff]  ;;  %v457_v33 = vld [vmem:[%s1320_s4 + $0x50] sm:$0xff] }
  0x10   :  { %v461_v39 = vld [vmem:[%s1320_s4 + $0x70] sm:$0xff]  ;;  %v656_v43 = vld [vmem:[%s1319_s3 + $0x1] ss:$0 sm:$0xff] }
  0x11   :  { %940 = vmatpush3.bf16.msra.mxu0 %v937_v12  ;;  %v448_v12 = vld [vmem:[%s1320_s4 + $0x8] sm:$0xff] }
  0x12   :  { %942 = vmatprep.subr.bf16.mxu0 %v941_v15  ;;  %v1006_v14 = vpack.c.bf16 %v448_v12, %v447_v11 }
  0x15   :  { %944 = vmatpush3.bf16.msra.mxu0 %v941_v15  ;;  %v449_v15 = vld [vmem:[%s1320_s4 + $0x10] sm:$0xff] }
  0x16   :  { %946 = vmatprep.subr.bf16.mxu0 %v945_v18  ;;  %v1009_v17 = vpack.c.bf16 %v450_v16, %v449_v15 }
  0x19   :  { %948 = vmatpush3.bf16.msra.mxu0 %v945_v18  ;;  %v451_v18 = vld [vmem:[%s1320_s4 + $0x20] sm:$0xff] }
  0x1a   :  { %950 = vmatprep.subr.bf16.mxu0 %v949_v21  ;;  %v1012_v20 = vpack.c.bf16 %v452_v19, %v451_v18 }
  0x1d   :  { %952 = vmatpush3.bf16.msra.mxu0 %v949_v21 }
  0x1e   :  { %954 = vmatprep.subr.bf16.mxu0 %v953_v24 }
  0x21   :  { %956 = vmatpush3.bf16.msra.mxu0 %v953_v24 }
  0x24   :  { %784 = vmatmul.mubr.f32.vlgmr.msra.gmra.mrb[0].mxu0 %v28_v25 }
  0x25   :  { %786 = vmatprep.mubr.f32.mxu0 %v29_v26 }
  0x28   :  { %787 = vmatmul.mubr.f32.gmra.mrb[2].mxu0 %v30_v27  ;;  %v453_v27 = vld [vmem:[%s1320_s4 + $0x30] sm:$0xff] }
  0x29   :  { %849 = vmatprep.mubr.msk.f32.mxu0 %vm139_vm0, %v23_v28  ;;  %v454_v28 = vld [vmem:[%s1320_s4 + $0x38] sm:$0xff] }
  0xf7   :  { %v785_v29 = vpop.f32.mrb[0].mxu0 }
  0xf8   :  { %v113_v30 = vpop.f32.mrb[1].mxu0 }
  0xf9   :  { %v957_v31 = vpack.c.bf16 %v785_v29, %v113_v30  ;;  %v1015_v29 = vpack.c.bf16 %v454_v28, %v453_v27  ;;  %v455_v30 = vld [vmem:[%s1320_s4 + $0x40] sm:$0xff] }
  0xfb   :  { %v788_v34 = vpop.f32.mrb[2].mxu0  ;;  %958 = vmatprep.subr.bf16.mxu1 %v957_v31 }
  0xfc   :  { %v123_v35 = vpop.f32.mrb[3].mxu0  ;;  %960 = vmatpush3.bf16.msra.mxu1 %v957_v31  ;;  %v456_v31 = vld [vmem:[%s1320_s4 + $0x48] sm:$0xff] }
  0xfd   :  { %v961_v36 = vpack.c.bf16 %v788_v34, %v123_v35  ;;  %v1018_v32 = vpack.c.bf16 %v456_v31, %v455_v30  ;;  %v458_v34 = vld [vmem:[%s1320_s4 + $0x58] sm:$0xff] }
  0xfe   :  { %v1021_v35 = vpack.c.bf16 %v458_v34, %v457_v33 }
  0xff   :  { %962 = vmatprep.subr.bf16.mxu1 %v961_v36 }
 0x100   :  { %964 = vmatpush3.bf16.msra.mxu1 %v961_v36  ;;  %v459_v36 = vld [vmem:[%s1320_s4 + $0x60] sm:$0xff] }
 0x101   :  { %966 = vmatprep.subr.bf16.mxu1 %v965_v37 }
 0x103   :  { %798 = vmatmul.mubr.msk.f32.vlgmr.msra.gmra.mrb[0].mxu1 %vm139_vm0, %v1174_v40 }
 0x104   :  { %800 = vmatprep.mubr.msk.f32.mxu1 %vm139_vm0, %v1179_v41  ;;  %968 = vmatpush3.bf16.msra.mxu1 %v965_v37  ;;  %v460_v37 = vld [vmem:[%s1320_s4 + $0x68] sm:$0xff] }
 0x105   :  { %970 = vmatprep.subr.bf16.mxu1 %v969_v42  ;;  %v1024_v38 = vpack.c.bf16 %v460_v37, %v459_v36 }
 0x107   :  { %801 = vmatmul.mubr.msk.f32.gmra.mrb[2].mxu1 %vm139_vm0, %v1194_v45 }
 0x108   :  { %972 = vmatpush3.bf16.msra.mxu1 %v969_v42  ;;  %v1058_v42 = vmov 0.0  }
 0x109   :  { %974 = vmatprep.subr.bf16.mxu1 %v973_v46 }
 0x10c   :  { %976 = vmatpush3.bf16.msra.mxu1 %v973_v46 }
 0x10d   :  { %978 = vmatprep.subr.bf16.mxu1 %v977_v49 }
 0x110   :  { %980 = vmatpush3.bf16.msra.mxu1 %v977_v49 }
 0x111   :  { %982 = vmatprep.subr.bf16.mxu1 %v981_v52 }
 0x114   :  { %984 = vmatpush3.bf16.msra.mxu1 %v981_v52 }
 0x115   :  { %986 = vmatprep.subr.bf16.mxu1 %v985_v55 }
 0x118   :  { %988 = vmatpush3.bf16.msra.mxu1 %v985_v55 }
 0x119   :  { %990 = vmatprep.subr.bf16.mxu1 %v989_v58 }
 0x11c   :  { %992 = vmatpush3.bf16.msra.mxu1 %v989_v58 }
 0x11d   :  { %994 = vmatprep.subr.bf16.mxu1 %v993_v61 }
 0x120   :  { %996 = vmatpush3.bf16.msra.mxu1 %v993_v61 }
 0x121   :  { %1029 = vmatprep.subr.bf16.mxu1 %v1056_v13 }
 0x1d6   :  { %v799_v63 = vpop.f32.mrb[0].mxu1 }
 0x1d7   :  { %v224_v0 = vadd.f32 %v799_v63, %v634_v62  ;;  %v218_v1 = vpop.f32.mrb[1].mxu1 }
 0x1d8   :  { %v219_v2 = vadd.f32 %v634_v62, %v218_v1 }
 0x1d9   :  { %v238_v5 = vmax.f32 %v224_v0, 0.0 }
 0x1da   :  { %v237_v3 = vmax.f32 %v219_v2, 0.0  ;;  %v802_v4 = vpop.f32.mrb[2].mxu1 }
 0x1db   :  { %v234_v6 = vadd.f32 %v802_v4, %v634_v62  ;;  %v228_v7 = vpop.f32.mrb[3].mxu1 }
 0x1dc   :  { %v229_v8 = vadd.f32 %v634_v62, %v228_v7  ;;  %835 = vmatprep.mubr.f32.mxu1 %v237_v3 }
 0x1dd   :  { %836 = vmatmul.mubr.f32.vlgmr.msra.gmra.mrb[4].mxu1 %v238_v5  ;;  %v240_v10 = vmax.f32 %v234_v6, 0.0  ;;  %v463_v6 = vld [vmem:[%s1321_s5] sm:$0x1] }
 0x1de   :  { %v239_v9 = vmax.f32 %v229_v8, 0.0  ;;  %1031 = vmatpush3.bf16.msra.mxu1 %v1006_v14 }
 0x1df   :  { %1032 = vmatprep.subr.bf16.mxu1 %v1056_v13 }
 0x1e0   :  { %838 = vmatprep.mubr.f32.mxu1 %v239_v9 }
 0x1e1   :  { %839 = vmatmul.mubr.f32.gmra.mrb[6].mxu1 %v240_v10  ;;  %v558_v10 = vld [vmem:[%s1321_s5] sm:$0x1] }
 0x1e2   :  { %1034 = vmatpush3.bf16.msra.mxu1 %v1009_v17  ;;  %922 = vmatprep.mubr.msk.f32.mxu1 %vm1057_vm1, %v1058_v42 }
 0x1e3   :  { %1035 = vmatprep.subr.bf16.mxu1 %v1056_v13 }
 0x1e6   :  { %1037 = vmatpush3.bf16.msra.mxu1 %v1012_v20 }
 0x1e7   :  { %1038 = vmatprep.subr.bf16.mxu1 %v1056_v13 }
 0x1ea   :  { %1040 = vmatpush3.bf16.msra.mxu1 %v1015_v29 }
 0x1eb   :  { %1041 = vmatprep.subr.bf16.mxu1 %v1056_v13 }
 0x1ee   :  { %1043 = vmatpush3.bf16.msra.mxu1 %v1018_v32 }
 0x1ef   :  { %1044 = vmatprep.subr.bf16.mxu1 %v1056_v13 }
 0x1f2   :  { %1046 = vmatpush3.bf16.msra.mxu1 %v1021_v35 }
 0x1f3   :  { %1047 = vmatprep.subr.bf16.mxu1 %v1056_v13 }
 0x1f6   :  { %1049 = vmatpush3.bf16.msra.mxu1 %v1024_v38 }
 0x1f7   :  { %1050 = vmatprep.subr.bf16.mxu1 %v1056_v13 }
 0x2b0   :  { %v837_v21 = vpop.f32.mrb[4].mxu1 }
 0x2b1   :  { %v324_v22 = vpop.f32.mrb[5].mxu1 }
 0x2b2   :  { %v997_v23 = vpack.c.bf16 %v837_v21, %v324_v22 }
 0x2b4   :  { %v840_v24 = vpop.f32.mrb[6].mxu1  ;;  %998 = vmatprep.subr.bf16.mxu0 %v997_v23 }
 0x2b5   :  { %v334_v25 = vpop.f32.mrb[7].mxu1  ;;  %1000 = vmatpush3.bf16.msra.mxu0 %v997_v23 }
 0x2b6   :  { %v1001_v26 = vpack.c.bf16 %v840_v24, %v334_v25 }
 0x2b8   :  { %1002 = vmatprep.subr.bf16.mxu0 %v1001_v26 }
 0x2b9   :  { %1004 = vmatpush3.bf16.msra.mxu0 %v1001_v26 }
 0x2ba   :  { %1005 = vmatprep.subr.bf16.mxu0 %v1056_v13 }
 0x2bc   :  { %850 = vmatmul.mubr.msk.f32.vlgmr.msra.gmra.mrb[4].mxu0 %vm139_vm0, %v1174_v40  ;;  %v462_v40 = vld [vmem:[%s1320_s4 + $0x78] sm:$0xff] }
 0x2bd   :  { %852 = vmatprep.mubr.msk.f32.mxu0 %vm139_vm0, %v1179_v41  ;;  %1007 = vmatpush3.bf16.msra.mxu0 %v1006_v14  ;;  %v1027_v41 = vpack.c.bf16 %v462_v40, %v461_v39 }
 0x2be   :  { %1008 = vmatprep.subr.bf16.mxu0 %v1056_v13 }
 0x2bf   :  { %1052 = vmatpush3.bf16.msra.mxu1 %v1027_v41 }
 0x2c0   :  { %853 = vmatmul.mubr.msk.f32.gmra.mrb[6].mxu0 %vm139_vm0, %v1194_v45 }
 0x2c1   :  { %1010 = vmatpush3.bf16.msra.mxu0 %v1009_v17  ;;  %887 = vmatprep.mubr.msk.f32.mxu0 %vm1057_vm1, %v1058_v42 }
 0x2c2   :  { %1011 = vmatprep.subr.bf16.mxu0 %v1056_v13 }
 0x2c5   :  { %1013 = vmatpush3.bf16.msra.mxu0 %v1012_v20 }
 0x2c6   :  { %1014 = vmatprep.subr.bf16.mxu0 %v1056_v13 }
 0x2c9   :  { %1016 = vmatpush3.bf16.msra.mxu0 %v1015_v29 }
 0x2ca   :  { %1017 = vmatprep.subr.bf16.mxu0 %v1056_v13 }
 0x2cd   :  { %1019 = vmatpush3.bf16.msra.mxu0 %v1018_v32 }
 0x2ce   :  { %1020 = vmatprep.subr.bf16.mxu0 %v1056_v13 }
 0x2d1   :  { %1022 = vmatpush3.bf16.msra.mxu0 %v1021_v35 }
 0x2d2   :  { %1023 = vmatprep.subr.bf16.mxu0 %v1056_v13 }
 0x2d5   :  { %1025 = vmatpush3.bf16.msra.mxu0 %v1024_v38 }
 0x2d6   :  { %1026 = vmatprep.subr.bf16.mxu0 %v1056_v13 }
 0x2d9   :  { %1028 = vmatpush3.bf16.msra.mxu0 %v1027_v41 }
 0x38f   :  { %v851_v44 = vpop.f32.mrb[4].mxu0 }
 0x390   :  { %v423_v45 = vadd.f32 %v851_v44, %v656_v43  ;;  %v417_v46 = vpop.f32.mrb[5].mxu0 }
 0x391   :  { %v418_v47 = vadd.f32 %v656_v43, %v417_v46 }
 0x392   :  { %v437_v48 = vmax.f32 %v423_v45, 0.0 }
 0x393   :  { %v436_v49 = vmax.f32 %v418_v47, 0.0  ;;  %v854_v50 = vpop.f32.mrb[6].mxu0 }
 0x394   :  { %v433_v51 = vadd.f32 %v854_v50, %v656_v43  ;;  %v427_v52 = vpop.f32.mrb[7].mxu0 }
 0x395   :  { %v440_v53 = vmax.f32 %v436_v49, %v437_v48  ;;  %v428_v54 = vadd.f32 %v656_v43, %v427_v52 }
 0x396   :  { %v439_v55 = vmax.f32 %v433_v51, 0.0 }
 0x397   :  { %v441_v56 = vrot.slane %v440_v53, 4  ;;  %v438_v57 = vmax.f32 %v428_v54, 0.0 }
 0x399   :  { %v442_v58 = vmax.f32 %v440_v53, %v441_v56  ;;  %v535_v59 = vmax.f32 %v438_v57, %v439_v55 }
 0x39b   :  { %v443_v60 = vrot.slane %v442_v58, 2  ;;  %v536_v61 = vrot.slane %v535_v59, 4 }
 0x39d   :  { %v444_v62 = vmax.f32 %v442_v58, %v443_v60  ;;  %v537_v63 = vmax.f32 %v535_v59, %v536_v61 }
 0x39f   :  { %v445_v0 = vrot.slane %v444_v62, 1  ;;  %v538_v1 = vrot.slane %v537_v63, 2 }
 0x3a1   :  { %v446_v2 = vmax.f32 %v444_v62, %v445_v0  ;;  %v539_v3 = vmax.f32 %v537_v63, %v538_v1 }
 0x3a3   :  { %v540_v4 = vrot.slane %v539_v3, 1  ;;  %888 = vmatmul.mubr.f32.vlgmr.msra.gmra.mrb[8].mxu0 %v446_v2 }
 0x3a5   :  { %v541_v5 = vmax.f32 %v539_v3, %v540_v4 }
 0x3a7   :  { %923 = vmatmul.mubr.f32.vlgmr.msra.gmra.mrb[8].mxu1 %v541_v5 }
 0x476   :  { %v530_v7 = vpop.f32.mrb[8].mxu0 }
 0x477   :  { %v531_v8 = vadd.f32 %v530_v7, %v463_v6  ;;  %v889_v9 = vpop.f32.mrb[9].mxu0 }
 0x479   :  { %534 = vst [vmem:[%s1322_s6] sm:$0x1] %v531_v8 }
 0x47a   :  { %v625_v11 = vpop.f32.mrb[8].mxu1 }
 0x47b   :  { %v626_v12 = vadd.f32 %v625_v11, %v558_v10  ;;  %v924_v13 = vpop.f32.mrb[9].mxu1 }
 0x47d   :  { %629 = vst [vmem:[%s1322_s6 + $0x1] sm:$0x1] %v626_v12 }

</bundles_post_ra>
